<compile_context>
chip_gen: v6e
topology: v6e:2x2x1
jax: 0.10.0
libtpu: 0.0.40
codegen_flags: <defaults>
</compile_context>

<pallas_src>
import functools

import jax
import jax.numpy as jnp
from jax.experimental import pallas as pl
from jax.experimental.pallas import tpu as pltpu


def _round_up(x, m):
    return ((x + m - 1) // m) * m


def _cdiv(a, b):
    return -(-a // b)


def _itemsize(dtype):
    return jnp.finfo(dtype).bits // 8


# ----------------------------------------------------------------------------
# VMEM budget / tile sizing (per TPU generation).
# ----------------------------------------------------------------------------
def _vmem_budget_bytes():
    try:
        info = pltpu.get_tpu_info()
        cap = int(getattr(info, "vmem_capacity_bytes", 128 << 20))
    except Exception:  # no TPU info available -> conservative default
        cap = 128 << 20
    # ~50 MiB on v7x (64 MiB physical), capped at ~100 MiB on v5e/v6e
    # (128 MiB physical) -> always leaves headroom for compiler scratch.
    return int(min(cap * 0.78, 100 << 20))


def _tile_sizes(n, cout_max, a_bytes, vmem_budget):
    """Pick (tm, tk, rows_pad, cols_pad) for the aggregation kernel.

    Largest roughly-square tile whose working set (Buffered(3) A tile,
    double-buffered HW / out tiles, f32 accumulator) fits in ~85% of the
    per-generation VMEM budget, then shrunk so padding of n is minimal.
    """
    usable = int(vmem_budget * 0.85)
    t = 256
    while t < 4096:
        nxt = t * 2
        need = (3 * nxt * nxt * a_bytes          # Buffered(3) A tile
                + 2 * nxt * cout_max * a_bytes   # double-buffered HW tile
                + 3 * nxt * cout_max * 4         # out (x2) + accumulator
                + 2 * 8 * cout_max * 4)          # bias
        if need > usable:
            break
        t = nxt
    num_r = max(1, _cdiv(n, t))
    tm = _round_up(_cdiv(n, num_r), 8)
    num_k = max(1, _cdiv(n, t))
    tk = _round_up(_cdiv(n, num_k), 128)
    return tm, tk, num_r * tm, num_k * tk


# ----------------------------------------------------------------------------
# Kernel 1: per-layer projection  HW = H @ W  (run once per layer, bf16 out).
# ----------------------------------------------------------------------------
def _proj_kernel(h_ref, w_ref, out_ref):
    out_ref[...] = jnp.dot(
        h_ref[...], w_ref[...],
        preferred_element_type=jnp.float32).astype(out_ref.dtype)


def _project(h, w, *, tp, out_dtype, vmem_budget):
    rows, cin = h.shape
    cout = w.shape[1]
    n_tiles = rows // tp
    ob = _itemsize(out_dtype)

    vmem_bytes = 2 * tp * cin * 4 + 2 * cin * cout * 4 + 2 * tp * cout * ob
    vmem_limit = int(min(max(vmem_bytes + (2 << 20), 16 << 20), vmem_budget))

    return pl.pallas_call(
        _proj_kernel,
        out_shape=jax.ShapeDtypeStruct((rows, cout), out_dtype),
        grid=(n_tiles,),
        in_specs=[
            pl.BlockSpec((tp, cin), lambda i: (i, 0)),    # H row tile
            pl.BlockSpec((cin, cout), lambda i: (0, 0)),  # W (resident)
        ],
        out_specs=pl.BlockSpec((tp, cout), lambda i: (i, 0)),
        compiler_params=pltpu.CompilerParams(
            dimension_semantics=("parallel",),
            vmem_limit_bytes=vmem_limit),
        cost_estimate=pl.CostEstimate(
            flops=2 * rows * cin * cout,
            transcendentals=0,
            bytes_accessed=rows * cin * 4 + cin * cout * 4 + rows * cout * ob),
    )(h, w)


# ----------------------------------------------------------------------------
# Kernel 2: aggregation  out = A_hat @ HW + b  (+ optional SiLU), K-tiled.
# ----------------------------------------------------------------------------
def _agg_kernel(a_ref, hw_ref, b_ref, out_ref, acc_ref, *, apply_silu):
    k = pl.program_id(1)

    # Guard on the "arbitrary" K axis only (megacore-safe on the parallel
    # row-tile axis).
    @pl.when(k == 0)
    def _():
        acc_ref[...] = jnp.zeros_like(acc_ref)

    acc_ref[...] += jnp.dot(a_ref[...], hw_ref[...],
                            preferred_element_type=jnp.float32)

    @pl.when(k == pl.num_programs(1) - 1)
    def _():
        out = acc_ref[...] + b_ref[...]
        if apply_silu:
            out = out * jax.nn.sigmoid(out)      # SiLU kept in f32
        out_ref[...] = out.astype(out_ref.dtype)


def _a_block_spec(tm, tk):
    # Triple-buffer the dominant (memory-bound) A stream when supported.
    try:
        return pl.BlockSpec((tm, tk), lambda i, k: (i, k),
                            pipeline_mode=pl.Buffered(3))
    except TypeError:
        return pl.BlockSpec((tm, tk), lambda i, k: (i, k))


def _aggregate(a_hat, hw, b, *, tm, tk, apply_silu, vmem_budget):
    rows, cols = a_hat.shape
    cout = hw.shape[1]
    a_bytes = a_hat.dtype.itemsize
    hw_bytes = hw.dtype.itemsize
    num_r, num_k = rows // tm, cols // tk

    flops = 2 * rows * cols * cout
    transcendentals = rows * cout if apply_silu else 0
    bytes_accessed = (rows * cols * a_bytes + cols * cout * hw_bytes
                      + cout * 4 + rows * cout * 4)

    vmem_bytes = (3 * tm * tk * a_bytes       # Buffered(3) A tile
                  + 2 * tk * cout * hw_bytes  # double-buffered HW tile
                  + 2 * 8 * cout * 4          # bias (padded tile)
                  + 2 * tm * cout * 4         # double-buffered out tile
                  + tm * cout * 4)            # accumulator scratch
    vmem_limit = int(min(max(vmem_bytes + (2 << 20), 16 << 20), vmem_budget))

    kernel = functools.partial(_agg_kernel, apply_silu=apply_silu)
    return pl.pallas_call(
        kernel,
        out_shape=jax.ShapeDtypeStruct((rows, cout), jnp.float32),
        grid=(num_r, num_k),                       # reduction axis last
        in_specs=[
            _a_block_spec(tm, tk),                               # A block
            pl.BlockSpec((tk, cout), lambda i, k: (k, 0)),       # HW block
            pl.BlockSpec((1, cout), lambda i, k: (0, 0)),        # bias
        ],
        out_specs=pl.BlockSpec((tm, cout), lambda i, k: (i, 0)),
        scratch_shapes=[pltpu.VMEM((tm, cout), jnp.float32)],
        compiler_params=pltpu.CompilerParams(
            dimension_semantics=("parallel", "arbitrary"),
            vmem_limit_bytes=vmem_limit),
        cost_estimate=pl.CostEstimate(
            flops=flops, transcendentals=transcendentals,
            bytes_accessed=bytes_accessed),
    )(a_hat, hw, b)


def _gcn_layer(a_hat, h, w, b, *, tm, tk, apply_silu, vmem_budget):
    # Projection hoisted out of the per-tile aggregation (runs once per
    # layer; emits bf16 so both MXU operands of the aggregation are bf16).
    hw = _project(h, w, tp=tk, out_dtype=a_hat.dtype, vmem_budget=vmem_budget)
    return _aggregate(a_hat, hw, b, tm=tm, tk=tk, apply_silu=apply_silu,
                      vmem_budget=vmem_budget)


# ----------------------------------------------------------------------------
# Glue: normalized adjacency built directly padded + in target dtype.
# ----------------------------------------------------------------------------
def _normalized_adjacency(edge_index, num_nodes, rows_pad, cols_pad, dtype):
    src, dst = edge_index[0], edge_index[1]
    loops = jnp.arange(num_nodes, dtype=edge_index.dtype)
    src = jnp.concatenate([src, loops])
    dst = jnp.concatenate([dst, loops])
    ew = jnp.ones_like(src, dtype=jnp.float32)
    deg = jnp.zeros((num_nodes,), jnp.float32).at[dst].add(ew)
    dinv = jnp.where(deg > 0, jax.lax.rsqrt(deg), 0.0)
    norm = (dinv[src] * ew * dinv[dst]).astype(dtype)
    # Single padded materialization in the target dtype.
    a_hat = jnp.zeros((rows_pad, cols_pad), dtype)
    # out[i] aggregates messages from sources j of edges (j -> i)
    return a_hat.at[dst, src].add(norm)


def _pad2(m, rows, cols):
    return jnp.pad(m, ((0, rows - m.shape[0]), (0, cols - m.shape[1])))


def variational_gcn_encoder(x, edge_index, params, *,
                            adjacency_dtype=jnp.bfloat16):
    """Returns (mu, logstd, edge_index), matching the PyTorch module."""
    n, f = x.shape
    out_c = params["wmu"].shape[1]
    hid = params["w1"].shape[1]          # 2 * out_channels

    # Lane-dense (multiple-of-128) feature dims.
    fp = _round_up(f, 128)
    c1p = _round_up(hid, 128)
    c2p = _round_up(out_c, 128)
    chp = _round_up(2 * out_c, 128)      # fused mu||logstd head width
    cout_max = max(c1p, c2p, chp)

    a_bytes = _itemsize(adjacency_dtype)
    vmem_budget = _vmem_budget_bytes()
    tm, tk, rows_pad, cols_pad = _tile_sizes(n, cout_max, a_bytes, vmem_budget)

    a_hat = _normalized_adjacency(edge_index, n, rows_pad, cols_pad,
                                  adjacency_dtype)

    def fit_rows(h):
        # Aggregation outputs rows_pad rows; the next projection needs
        # cols_pad rows (A's padded columns are zero, so zero-fill is safe).
        if h.shape[0] == cols_pad:
            return h
        if h.shape[0] > cols_pad:
            return h[:cols_pad]
        return jnp.pad(h, ((0, cols_pad - h.shape[0]), (0, 0)))

    xp = _pad2(x.astype(jnp.float32), cols_pad, fp)

    w1 = _pad2(params["w1"], fp, c1p)
    b1 = _pad2(params["b1"].reshape(1, -1), 1, c1p)
    w2 = _pad2(params["w2"], c1p, c2p)
    b2 = _pad2(params["b2"].reshape(1, -1), 1, c2p)
    # Fused heads: one projection + one aggregation for mu and logstd.
    wcat = _pad2(jnp.concatenate([params["wmu"], params["wls"]], axis=1),
                 c2p, chp)
    bcat = _pad2(jnp.concatenate([params["bmu"], params["bls"]]).reshape(1, -1),
                 1, chp)

    layer = functools.partial(_gcn_layer, tm=tm, tk=tk,
                              vmem_budget=vmem_budget)
    h1 = layer(a_hat, xp, w1, b1, apply_silu=True)
    h2 = layer(a_hat, fit_rows(h1), w2, b2, apply_silu=True)
    heads = layer(a_hat, fit_rows(h2), wcat, bcat, apply_silu=False)

    mu = heads[:n, :out_c]
    logstd = heads[:n, out_c:2 * out_c]
    return mu, logstd, edge_index


# ----------------------------------------------------------------------------
# Pure-JAX reference (f32, un-padded) and param init.
# ----------------------------------------------------------------------------
def _reference(x, edge_index, params):
    n = x.shape[0]
    a = _normalized_adjacency(edge_index, n, n, n, jnp.float32)
    gcn = lambda h, w, b: a @ (h @ w) + b
    silu = lambda h: h * jax.nn.sigmoid(h)
    h = silu(gcn(x, params["w1"], params["b1"]))
    h = silu(gcn(h, params["w2"], params["b2"]))
    return gcn(h, params["wmu"], params["bmu"]), gcn(h, params["wls"], params["bls"])


def init_params(key, in_channels, out_channels):
    ks = jax.random.split(key, 4)

    def glorot(k, fan_in, fan_out):
        lim = (6.0 / (fan_in + fan_out)) ** 0.5
        return jax.random.uniform(k, (fan_in, fan_out), jnp.float32, -lim, lim)

    return {
        "w1": glorot(ks[0], in_channels, 2 * out_channels),
        "b1": jnp.zeros((2 * out_channels,), jnp.float32),
        "w2": glorot(ks[1], 2 * out_channels, out_channels),
        "b2": jnp.zeros((out_channels,), jnp.float32),
        "wmu": glorot(ks[2], out_channels, out_channels),
        "bmu": jnp.zeros((out_channels,), jnp.float32),
        "wls": glorot(ks[3], out_channels, out_channels),
        "bls": jnp.zeros((out_channels,), jnp.float32),
    }


if __name__ == "__main__":
    key = jax.random.PRNGKey(0)
    k_x, k_p = jax.random.split(key)

    num_nodes = 16
    in_channels = 16
    out_channels = 8

    x = jax.random.normal(k_x, (num_nodes, in_channels), jnp.float32)
    # simple deterministic graph: ring edges in both directions
    src = jnp.arange(num_nodes, dtype=jnp.int32)
    dst = (src + 1) % num_nodes
    edge_index = jnp.concatenate(
        [jnp.stack([src, dst]), jnp.stack([dst, src])], axis=1)  # [2, 32]

    params = init_params(k_p, in_channels, out_channels)

    mu, logstd, ei = variational_gcn_encoder(x, edge_index, params)
    jax.block_until_ready((mu, logstd, ei))

    mu_ref, ls_ref = _reference(x, edge_index, params)
    # bf16 adjacency + bf16 HW -> loosen tolerance vs the f32 reference
    assert jnp.allclose(mu, mu_ref, atol=5e-2, rtol=5e-2), \
        float(jnp.max(jnp.abs(mu - mu_ref)))
    assert jnp.allclose(logstd, ls_ref, atol=5e-2, rtol=5e-2), \
        float(jnp.max(jnp.abs(logstd - ls_ref)))
    assert mu.shape == (num_nodes, out_channels)
    assert logstd.shape == (num_nodes, out_channels)

    print("KERNEL_OK")
</pallas_src>

<mosaic_0001>
module attributes {stable_mosaic.version = 11 : i64} {
  func.func @_proj_kernel(%arg0: i32, %arg1: memref<128x128xf32, #tpu.memory_space<vmem>>, %arg2: memref<128x128xf32, #tpu.memory_space<vmem>>, %arg3: memref<128x128xbf16, #tpu.memory_space<vmem>>) attributes {dimension_semantics = [#tpu.dimension_semantics<parallel>], iteration_bounds = array<i64: 1>, scalar_prefetch = 0 : i64, scratch_operands = 0 : i64, tpu.core_type = #tpu.core_type<tc>, window_params = [{transform_indices = @transform_0, window_bounds = array<i64: 128, 128>}, {pipeline_mode = #tpu.pipeline_mode<synchronous>, transform_indices = @transform_1, window_bounds = array<i64: 128, 128>}, {transform_indices = @transform_2, window_bounds = array<i64: 128, 128>}]} {
    %c0 = arith.constant 0 : index
    %c0_0 = arith.constant 0 : index
    %0 = vector.load %arg1[%c0, %c0_0] : memref<128x128xf32, #tpu.memory_space<vmem>>, vector<128x128xf32>
    %c0_1 = arith.constant 0 : index
    %c0_2 = arith.constant 0 : index
    %1 = vector.load %arg2[%c0_1, %c0_2] : memref<128x128xf32, #tpu.memory_space<vmem>>, vector<128x128xf32>
    %cst = arith.constant dense<0.000000e+00> : vector<128x128xf32>
    %2 = tpu.matmul %0, %1, %cst {dimension_numbers = #tpu.dot_dimension_numbers<[1], [0], [0], [1], [0, 0, 1, 1], [], []>} : vector<128x128xf32>, vector<128x128xf32>, vector<128x128xf32> -> vector<128x128xf32>
    %3 = arith.truncf %2 : vector<128x128xf32> to vector<128x128xbf16>
    %c0_3 = arith.constant 0 : index
    %c0_4 = arith.constant 0 : index
    %4 = vector.load %arg3[%c0_3, %c0_4] : memref<128x128xbf16, #tpu.memory_space<vmem>>, vector<128x128xbf16>
    tpu.vector_store %arg3[%c0_3, %c0_4], %3 {strides = array<i32>} : memref<128x128xbf16, #tpu.memory_space<vmem>>, vector<128x128xbf16>,
    return
  }
  func.func @transform_0(%arg0: i32) -> (i32, i32) {
    %c0_i32 = arith.constant 0 : i32
    %c0_i32_0 = arith.constant 0 : i32
    return %arg0, %c0_i32 : i32, i32
  }
  func.func @transform_1(%arg0: i32) -> (i32, i32) {
    %c0_i32 = arith.constant 0 : i32
    %c0_i32_0 = arith.constant 0 : i32
    %c0_i32_1 = arith.constant 0 : i32
    return %c0_i32, %c0_i32_0 : i32, i32
  }
  func.func @transform_2(%arg0: i32) -> (i32, i32) {
    %c0_i32 = arith.constant 0 : i32
    %c0_i32_0 = arith.constant 0 : i32
    return %arg0, %c0_i32 : i32, i32
  }
}

</mosaic_0001>

<bundles_post_ra>
// kernel: tpu_custom_call.1
= control target key start
LH: loop header
LB: loop body
LE: loop exit
PB: predicated region body
PF: predicated region fallthrough
CT: control target
= control target key end

     0   :  { %7 = vsyncpa [#allocation3], 0  ;;  %s618_s0 = inlined_call_operand.hbm [shape: f32[128,128], index: 0, kind: input, shape index: {}]   ;;  %s619_s1 = inlined_call_operand.hbm [shape: f32[128,128], index: 1, kind: input, shape index: {}]   ;;  %s620_s2 = inlined_call_operand.hbm [shape: bf16[128,128], index: 2, kind: output, shape index: {}]  }
   0x1   :  { %8 = vsyncpa [#allocation6], 0 }
   0x2   :  { %9 = vsyncpa [#allocation4], 0  ;;  %s587_s9 = smov [#allocation2]  }
   0x3   :  { %s15_s10 = sshll.u32 %s587_s9, 4  ;;  %s16_s10 = int_to_ptr.vmem [resolvable:$true] %s15_s10 }
   0x4   :  { %s529_s11 = scalar_lea.vmem %s16_s10, 2048  ;;  %p534_p1 = scmp.lt.s32.totalorder %s16_s10, %s16_s10 }
   0x5   :  { %p530_p0 = scmp.ne.s32.totalorder %s16_s10, %s529_s11  ;;  %p535_p2 = scmp.lt.s32.totalorder %s529_s11, %s529_s11 }
   0x7   :  { %p536_p3 = por %p535_p2, %p534_p1 }
   0x9   :  { %p537_p4 = pnand %p536_p3, %p530_p0 }
   0xb   :  { %540 = shalt.err (!%p537_p4)
}
   0xc   :  { %s588_s12 = smov 128   ;;  %s589_s13 = smov 8  }
   0xd   :  { %21 = dma.hbm_to_vmem [thread:$0]  %s618_s0, 2048, %s16_s10, [#allocation3], %s588_s12, %s588_s12, %s589_s13  }
   0xe   :  { %s590_s16 = smov [#allocation5]  }
   0xf   :  { %s27_s17 = sshll.u32 %s590_s16, 4  ;;  %s28_s17 = int_to_ptr.vmem [resolvable:$true] %s27_s17 }
  0x10   :  { %s549_s18 = scalar_lea.vmem %s28_s17, 2048  ;;  %p554_p6 = scmp.lt.s32.totalorder %s28_s17, %s28_s17 }
  0x11   :  { %p550_p5 = scmp.ne.s32.totalorder %s28_s17, %s549_s18  ;;  %p555_p7 = scmp.lt.s32.totalorder %s549_s18, %s549_s18 }
  0x13   :  { %p556_p8 = por %p555_p7, %p554_p6 }
  0x15   :  { %p557_p9 = pnand %p556_p8, %p550_p5 }
  0x17   :  { %560 = shalt.err (!%p557_p9)
}
  0x18   :  { %33 = dma.hbm_to_vmem [thread:$0]  %s619_s1, 2048, %s28_s17, [#allocation6], %s588_s12, %s588_s12, %s589_s13  }
  0x19   :  { %581 = dma.done.wait [#allocation3], 2048  }
  0x1a   :  { %582 = vsyncadd [#allocation3], 4294965248 }
  0x1b   :  { %583 = dma.done.wait [#allocation6], 2048  }
  0x1c   :  { %584 = vsyncadd [#allocation6], 4294965248  ;;  %v71_v0 = vld [vmem:[#allocation5 + $0x78] sm:$0xff]  ;;  %v70_v1 = vld [vmem:[#allocation5 + $0x70] sm:$0xff]  ;;  %s591_s0 = smov [#allocation7]  }
  0x1d   :  { %426 = vmatprep.subr.mxu0 %v71_v0  ;;  %482 = vmatprep.subr.mxu1 %v71_v0  ;;  %v69_v2 = vld [vmem:[#allocation5 + $0x68] sm:$0xff]  ;;  %v68_v3 = vld [vmem:[#allocation5 + $0x60] sm:$0xff]  ;;  %v67_v4 = vld [vmem:[#allocation5 + $0x58] sm:$0xff]  ;;  %s302_s1 = sshll.u32 %s591_s0, 4  ;;  %s303_s1 = int_to_ptr.vmem [resolvable:$true] %s302_s1 }
  0x1e   :  { %427 = vmatpush3.msra.mxu0 %v71_v0  ;;  %498 = vmatpush3.msra.mxu1 %v71_v0  ;;  %v66_v5 = vld [vmem:[#allocation5 + $0x50] sm:$0xff]  ;;  %v65_v6 = vld [vmem:[#allocation5 + $0x48] sm:$0xff]  ;;  %v64_v7 = vld [vmem:[#allocation5 + $0x40] sm:$0xff]  ;;  %s561_s21 = scalar_lea.vmem %s303_s1, 1024  ;;  %p566_p11 = scmp.lt.s32.totalorder %s303_s1, %s303_s1 }
  0x1f   :  { %428 = vmatprep.subr.mxu0 %v70_v1  ;;  %483 = vmatprep.subr.mxu1 %v70_v1  ;;  %v63_v8 = vld [vmem:[#allocation5 + $0x38] sm:$0xff]  ;;  %v62_v9 = vld [vmem:[#allocation5 + $0x30] sm:$0xff]  ;;  %v61_v10 = vld [vmem:[#allocation5 + $0x28] sm:$0xff]  ;;  %p562_p10 = scmp.ne.s32.totalorder %s303_s1, %s561_s21  ;;  %p567_p12 = scmp.lt.s32.totalorder %s561_s21, %s561_s21 }
  0x20   :  { %429 = vmatpush3.msra.mxu0 %v70_v1  ;;  %499 = vmatpush3.msra.mxu1 %v70_v1  ;;  %v60_v11 = vld [vmem:[#allocation5 + $0x20] sm:$0xff]  ;;  %v59_v12 = vld [vmem:[#allocation5 + $0x18] sm:$0xff]  ;;  %v58_v13 = vld [vmem:[#allocation5 + $0x10] sm:$0xff] }
  0x21   :  { %430 = vmatprep.subr.mxu0 %v69_v2  ;;  %484 = vmatprep.subr.mxu1 %v69_v2  ;;  %v57_v14 = vld [vmem:[#allocation5 + $0x8] sm:$0xff]  ;;  %v56_v15 = vld [vmem:[#allocation5] sm:$0xff]  ;;  %v42_v20 = vld [vmem:[#allocation2 + $0x10] sm:$0xff]  ;;  %p568_p13 = por %p567_p12, %p566_p11 }
  0x22   :  { %431 = vmatpush3.msra.mxu0 %v69_v2  ;;  %500 = vmatpush3.msra.mxu1 %v69_v2  ;;  %v40_v16 = vld [vmem:[#allocation2] sm:$0xff]  ;;  %v41_v18 = vld [vmem:[#allocation2 + $0x8] sm:$0xff]  ;;  %v50_v21 = vld [vmem:[#allocation2 + $0x50] sm:$0xff] }
  0x23   :  { %432 = vmatprep.subr.mxu0 %v68_v3  ;;  %485 = vmatprep.subr.mxu1 %v68_v3  ;;  %v48_v17 = vld [vmem:[#allocation2 + $0x40] sm:$0xff]  ;;  %v49_v19 = vld [vmem:[#allocation2 + $0x48] sm:$0xff]  ;;  %v43_v22 = vld [vmem:[#allocation2 + $0x18] sm:$0xff]  ;;  %p569_p0 = pnand %p568_p13, %p562_p10 }
  0x24   :  { %433 = vmatpush3.msra.mxu0 %v68_v3  ;;  %501 = vmatpush3.msra.mxu1 %v68_v3  ;;  %v51_v23 = vld [vmem:[#allocation2 + $0x58] sm:$0xff]  ;;  %v44_v24 = vld [vmem:[#allocation2 + $0x20] sm:$0xff]  ;;  %v45_v26 = vld [vmem:[#allocation2 + $0x28] sm:$0xff] }
  0x25   :  { %434 = vmatprep.subr.mxu0 %v67_v4  ;;  %486 = vmatprep.subr.mxu1 %v67_v4  ;;  %v52_v25 = vld [vmem:[#allocation2 + $0x60] sm:$0xff]  ;;  %v53_v27 = vld [vmem:[#allocation2 + $0x68] sm:$0xff]  ;;  %v46_v28 = vld [vmem:[#allocation2 + $0x30] sm:$0xff] }
  0x26   :  { %435 = vmatpush3.msra.mxu0 %v67_v4  ;;  %502 = vmatpush3.msra.mxu1 %v67_v4  ;;  %v54_v29 = vld [vmem:[#allocation2 + $0x70] sm:$0xff]  ;;  %v47_v30 = vld [vmem:[#allocation2 + $0x38] sm:$0xff] }
  0x27   :  { %436 = vmatprep.subr.mxu0 %v66_v5  ;;  %487 = vmatprep.subr.mxu1 %v66_v5  ;;  %v55_v31 = vld [vmem:[#allocation2 + $0x78] sm:$0xff] }
  0x28   :  { %437 = vmatpush3.msra.mxu0 %v66_v5  ;;  %503 = vmatpush3.msra.mxu1 %v66_v5 }
  0x29   :  { %438 = vmatprep.subr.mxu0 %v65_v6  ;;  %488 = vmatprep.subr.mxu1 %v65_v6 }
  0x2a   :  { %439 = vmatpush3.msra.mxu0 %v65_v6  ;;  %504 = vmatpush3.msra.mxu1 %v65_v6 }
  0x2b   :  { %440 = vmatprep.subr.mxu0 %v64_v7  ;;  %489 = vmatprep.subr.mxu1 %v64_v7 }
  0x2c   :  { %441 = vmatpush3.msra.mxu0 %v64_v7  ;;  %505 = vmatpush3.msra.mxu1 %v64_v7 }
  0x2d   :  { %442 = vmatprep.subr.mxu0 %v63_v8  ;;  %490 = vmatprep.subr.mxu1 %v63_v8 }
  0x2e   :  { %443 = vmatpush3.msra.mxu0 %v63_v8  ;;  %506 = vmatpush3.msra.mxu1 %v63_v8 }
  0x2f   :  { %444 = vmatprep.subr.mxu0 %v62_v9  ;;  %491 = vmatprep.subr.mxu1 %v62_v9 }
  0x30   :  { %445 = vmatpush3.msra.mxu0 %v62_v9  ;;  %507 = vmatpush3.msra.mxu1 %v62_v9 }
  0x31   :  { %446 = vmatprep.subr.mxu0 %v61_v10  ;;  %492 = vmatprep.subr.mxu1 %v61_v10 }
  0x32   :  { %447 = vmatpush3.msra.mxu0 %v61_v10  ;;  %508 = vmatpush3.msra.mxu1 %v61_v10 }
  0x33   :  { %448 = vmatprep.subr.mxu0 %v60_v11  ;;  %493 = vmatprep.subr.mxu1 %v60_v11 }
  0x34   :  { %449 = vmatpush3.msra.mxu0 %v60_v11  ;;  %509 = vmatpush3.msra.mxu1 %v60_v11 }
  0x35   :  { %450 = vmatprep.subr.mxu0 %v59_v12  ;;  %494 = vmatprep.subr.mxu1 %v59_v12 }
  0x36   :  { %451 = vmatpush3.msra.mxu0 %v59_v12  ;;  %510 = vmatpush3.msra.mxu1 %v59_v12 }
  0x37   :  { %452 = vmatprep.subr.mxu0 %v58_v13  ;;  %495 = vmatprep.subr.mxu1 %v58_v13 }
  0x38   :  { %453 = vmatpush3.msra.mxu0 %v58_v13  ;;  %511 = vmatpush3.msra.mxu1 %v58_v13 }
  0x39   :  { %454 = vmatprep.subr.mxu0 %v57_v14  ;;  %496 = vmatprep.subr.mxu1 %v57_v14 }
  0x3a   :  { %455 = vmatpush3.msra.mxu0 %v57_v14  ;;  %512 = vmatpush3.msra.mxu1 %v57_v14 }
  0x3b   :  { %456 = vmatprep.subr.mxu0 %v56_v15  ;;  %497 = vmatprep.subr.mxu1 %v56_v15 }
  0x3c   :  { %457 = vmatpush3.msra.mxu0 %v56_v15  ;;  %513 = vmatpush3.msra.mxu1 %v56_v15 }
  0x3d   :  { %458 = vmatprep.mubr.f32.mxu0 %v40_v16  ;;  %470 = vmatprep.mubr.f32.mxu1 %v48_v17 }
  0x3e   :  { %459 = vmatmul.mubr.f32.vlgmr.msra.gmra.mxu0 %v41_v18  ;;  %471 = vmatmul.mubr.f32.vlgmr.msra.gmra.mxu1 %v49_v19 }
  0x3f   :  { %461 = vmatprep.mubr.f32.mxu0 %v42_v20  ;;  %473 = vmatprep.mubr.f32.mxu1 %v50_v21 }
  0x42   :  { %462 = vmatmul.mubr.f32.gmra.mxu0 %v43_v22  ;;  %474 = vmatmul.mubr.f32.gmra.mxu1 %v51_v23 }
  0x43   :  { %464 = vmatprep.mubr.f32.mxu0 %v44_v24  ;;  %476 = vmatprep.mubr.f32.mxu1 %v52_v25 }
  0x46   :  { %465 = vmatmul.mubr.f32.gmra.mxu0 %v45_v26  ;;  %477 = vmatmul.mubr.f32.gmra.mxu1 %v53_v27 }
  0x47   :  { %467 = vmatprep.mubr.f32.mxu0 %v46_v28  ;;  %479 = vmatprep.mubr.f32.mxu1 %v54_v29 }
  0x4a   :  { %468 = vmatmul.mubr.f32.gmra.mxu0 %v47_v30  ;;  %480 = vmatmul.mubr.f32.gmra.mxu1 %v55_v31 }
  0xfe   :  { %v460_v32 = vpop.f32.mrf.mxu0  ;;  %v472_v33 = vpop.f32.mrf.mxu1 }
 0x100   :  { %v138_v34 = vpop.f32.mrf.mxu0  ;;  %v178_v35 = vpop.f32.mrf.mxu1 }
 0x101   :  { %v350_v36 = vpack.c.bf16 %v460_v32, %v138_v34  ;;  %v370_v37 = vpack.c.bf16 %v472_v33, %v178_v35 }
 0x102   :  { %v463_v38 = vpop.f32.mrf.mxu0  ;;  %v475_v39 = vpop.f32.mrf.mxu1 }
 0x103   :  { %351 = vst [vmem:[#allocation7] sm:$0xff] %v350_v36   ;;  %390 = vst [vmem:[#allocation7 + $0x20] sm:$0xff] %v370_v37  }
 0x104   :  { %v148_v40 = vpop.f32.mrf.mxu0  ;;  %v188_v41 = vpop.f32.mrf.mxu1 }
 0x105   :  { %v355_v42 = vpack.c.bf16 %v463_v38, %v148_v40  ;;  %v375_v43 = vpack.c.bf16 %v475_v39, %v188_v41 }
 0x106   :  { %v466_v44 = vpop.f32.mrf.mxu0  ;;  %v478_v45 = vpop.f32.mrf.mxu1 }
 0x107   :  { %387 = vst [vmem:[#allocation7 + $0x8] sm:$0xff] %v355_v42   ;;  %391 = vst [vmem:[#allocation7 + $0x28] sm:$0xff] %v375_v43  }
 0x108   :  { %v158_v46 = vpop.f32.mrf.mxu0  ;;  %v198_v47 = vpop.f32.mrf.mxu1 }
 0x109   :  { %v360_v48 = vpack.c.bf16 %v466_v44, %v158_v46  ;;  %v380_v49 = vpack.c.bf16 %v478_v45, %v198_v47 }
 0x10a   :  { %v469_v50 = vpop.f32.mrf.mxu0  ;;  %v481_v51 = vpop.f32.mrf.mxu1 }
 0x10b   :  { %388 = vst [vmem:[#allocation7 + $0x10] sm:$0xff] %v360_v48   ;;  %392 = vst [vmem:[#allocation7 + $0x30] sm:$0xff] %v380_v49  }
 0x10c   :  { %v168_v52 = vpop.f32.mrf.mxu0  ;;  %v208_v53 = vpop.f32.mrf.mxu1 }
 0x10d   :  { %v365_v54 = vpack.c.bf16 %v469_v50, %v168_v52  ;;  %v385_v55 = vpack.c.bf16 %v481_v51, %v208_v53 }
 0x10f   :  { %389 = vst [vmem:[#allocation7 + $0x18] sm:$0xff] %v365_v54   ;;  %393 = vst [vmem:[#allocation7 + $0x38] sm:$0xff] %v385_v55  }
 0x110   :  { %572 = shalt.err (!%p569_p0)
}
 0x111   :  { %s592_s22 = smov 64   ;;  %s593_s23 = smov 4  }
 0x112   :  { %308 = dma.vmem_to_hbm [thread:$0]  %s303_s1, 1024, %s620_s2, [#allocation4], %s592_s22, %s592_s22, %s593_s23  }
 0x113   :  { %585 = dma.done.wait [#allocation4], 1024  }
 0x114   :  { %586 = vsyncadd [#allocation4], 4294966272 }
 0x115   :  { %312 = vsyncpa [#allocation3], 1 }
 0x116   :  { %313 = vsyncpa [#allocation6], 1 }
 0x117   :  { %314 = vsyncpa [#allocation4], 1 }

</bundles_post_ra>
